<compile_context>
chip_gen: v7x
topology: tpu7x:2x2x1
jax: 0.10.0
libtpu: 0.0.40
codegen_flags: <defaults>
</compile_context>

<pallas_src>
import jax
import jax.numpy as jnp
from jax.experimental import pallas as pl
from jax.experimental.pallas import tpu as pltpu

EPS = 1e-5
MOMENTUM = 0.1


def _round_up(x, m):
    return (x + m - 1) // m * m


# ----------------------------- Pallas kernels ------------------------------

def _bn_stats_kernel(x_ref, sum_ref, sumsq_ref):
    """Accumulate per-feature sum and sum-of-squares over the batch grid axis."""
    @pl.when(pl.program_id(0) == 0)
    def _():
        sum_ref[...] = jnp.zeros_like(sum_ref)
        sumsq_ref[...] = jnp.zeros_like(sumsq_ref)

    x = x_ref[...]
    sum_ref[...] += jnp.sum(x, axis=0, keepdims=True)
    sumsq_ref[...] += jnp.sum(x * x, axis=0, keepdims=True)


def _bn_apply_kernel(x_ref, scale_ref, shift_ref, o_ref):
    """out = x * scale + shift  (BatchNorm folded to one FMA per element)."""
    o_ref[...] = x_ref[...] * scale_ref[...] + shift_ref[...]


# ------------------------------ call wrappers -------------------------------

def _batch_sums(x_pad, tb):
    """Per-feature sum and sum-of-squares of the (padded) batch, via Pallas."""
    Bp, Fp = x_pad.shape
    nb = Bp // tb
    return pl.pallas_call(
        _bn_stats_kernel,
        out_shape=(jax.ShapeDtypeStruct((1, Fp), jnp.float32),
                   jax.ShapeDtypeStruct((1, Fp), jnp.float32)),
        grid_spec=pltpu.PrefetchScalarGridSpec(
            num_scalar_prefetch=0,
            grid=(nb,),
            in_specs=[pl.BlockSpec((tb, Fp), lambda i: (i, 0))],
            out_specs=(pl.BlockSpec((1, Fp), lambda i: (0, 0)),
                       pl.BlockSpec((1, Fp), lambda i: (0, 0)))),
        compiler_params=pltpu.CompilerParams(
            dimension_semantics=("arbitrary",),        # reduction over batch
            vmem_limit_bytes=32 * 1024 * 1024),
        cost_estimate=pl.CostEstimate(
            flops=3 * Bp * Fp, transcendentals=0,
            bytes_accessed=Bp * Fp * 4 + 2 * Fp * 4),
    )(x_pad)


def _apply_scale_shift(x_pad, scale_row, shift_row, tb):
    """out = x * scale + shift, batch-tiled ('parallel') and lane-dense."""
    Bp, Fp = x_pad.shape
    nb = Bp // tb
    return pl.pallas_call(
        _bn_apply_kernel,
        out_shape=jax.ShapeDtypeStruct((Bp, Fp), x_pad.dtype),
        grid_spec=pltpu.PrefetchScalarGridSpec(
            num_scalar_prefetch=0,
            grid=(nb,),
            in_specs=[pl.BlockSpec((tb, Fp), lambda i: (i, 0)),
                      pl.BlockSpec((1, Fp), lambda i: (0, 0)),
                      pl.BlockSpec((1, Fp), lambda i: (0, 0))],
            out_specs=pl.BlockSpec((tb, Fp), lambda i: (i, 0))),
        compiler_params=pltpu.CompilerParams(
            dimension_semantics=("parallel",),         # megacore-splittable
            vmem_limit_bytes=32 * 1024 * 1024),
        cost_estimate=pl.CostEstimate(
            flops=2 * Bp * Fp, transcendentals=0,
            bytes_accessed=2 * Bp * Fp * 4 + 2 * Fp * 4),
    )(x_pad, scale_row, shift_row)


def batchnorm1d_forward(x, weight, bias, running_mean, running_var, *,
                        training, eps=EPS, momentum=MOMENTUM, block_b=256):
    """Forward pass of the custom BatchNorm1d module.

    Returns (out, new_running_mean, new_running_var).  The torch module
    mutates its running buffers in-place under no_grad; here the updated
    buffers are returned instead (unchanged in eval mode).
    """
    B, F = x.shape

    # Lane-dense feature axis (multiple of 128); sublane-aligned batch tile.
    Fp = _round_up(F, 128)
    tb = min(block_b, _round_up(B, 8))       # both multiples of 8
    Bp = _round_up(B, tb)

    x_pad = x
    if (Bp, Fp) != (B, F):
        # Zero padding: padded rows/cols contribute 0 to sum and sum-of-squares,
        # and padded feature columns get scale = shift = 0 below.
        x_pad = jnp.zeros((Bp, Fp), x.dtype).at[:B, :F].set(x)

    if training:
        s, ss = _batch_sums(x_pad, tb)
        s = s[0, :F]
        ss = ss[0, :F]
        mean = s / B
        # torch.var(x, 0) (unbiased, /(B-1)) * B/(B-1)  ==  sum((x-mean)^2) * B/(B-1)^2
        var = (ss - s * mean) * (B / ((B - 1.0) ** 2))
        new_running_mean = (1.0 - momentum) * running_mean + momentum * mean
        new_running_var = (1.0 - momentum) * running_var + momentum * var
    else:
        mean, var = running_mean, running_var
        new_running_mean, new_running_var = running_mean, running_var

    # Fold normalization + affine into one per-feature scale/shift, computed
    # once on (F,) vectors in the wrapper (not per-element inside the kernel).
    inv_std = 1.0 / jnp.sqrt(var + eps)
    scale = weight * inv_std
    shift = bias - mean * scale

    scale_row = jnp.zeros((1, Fp), jnp.float32).at[0, :F].set(scale)
    shift_row = jnp.zeros((1, Fp), jnp.float32).at[0, :F].set(shift)

    out = _apply_scale_shift(x_pad, scale_row, shift_row, tb)[:B, :F]
    return out, new_running_mean, new_running_var


# ------------------------------ pure-JAX reference --------------------------

def reference_batchnorm1d(x, weight, bias, running_mean, running_var, *,
                          training, eps=EPS, momentum=MOMENTUM):
    """Faithful pure-JAX port of the torch module's forward."""
    B = x.shape[0]
    if training:
        mean = jnp.mean(x, axis=0)
        var = jnp.var(x, axis=0, ddof=1) * B / (B - 1)   # torch.var * B/(B-1)
        new_rm = (1.0 - momentum) * running_mean + momentum * mean
        new_rv = (1.0 - momentum) * running_var + momentum * var
    else:
        mean, var = running_mean, running_var
        new_rm, new_rv = running_mean, running_var
    out = (x - mean) / jnp.sqrt(var + eps)
    out = weight * out + bias
    return out, new_rm, new_rv


# ----------------------------------- demo -----------------------------------

if __name__ == "__main__":
    B, F = 1024, 256      # small, but big enough to exercise the batch grid

    key = jax.random.PRNGKey(0)
    kx, kw, kb, km, kv = jax.random.split(key, 5)
    x = jax.random.normal(kx, (B, F), dtype=jnp.float32)

    # Parameters / buffers exactly as the module initializes them
    # (weight=1, bias=0, running_mean=0, running_var=0 for this custom module).
    weight0 = jnp.ones((F,), jnp.float32)
    bias0 = jnp.zeros((F,), jnp.float32)
    rmean0 = jnp.zeros((F,), jnp.float32)
    rvar0 = jnp.zeros((F,), jnp.float32)

    # ---- training-mode forward (default module state): batch stats + buffer update
    out_tr, rm_tr, rv_tr = batchnorm1d_forward(
        x, weight0, bias0, rmean0, rvar0, training=True)
    jax.block_until_ready((out_tr, rm_tr, rv_tr))

    ref_out_tr, ref_rm_tr, ref_rv_tr = reference_batchnorm1d(
        x, weight0, bias0, rmean0, rvar0, training=True)
    assert jnp.allclose(out_tr, ref_out_tr, rtol=1e-4, atol=1e-4)
    assert jnp.allclose(rm_tr, ref_rm_tr, rtol=1e-4, atol=1e-4)
    assert jnp.allclose(rv_tr, ref_rv_tr, rtol=1e-4, atol=1e-4)

    # ---- eval-mode forward with non-trivial ("trained") params / buffers
    weight = 1.0 + 0.5 * jax.random.normal(kw, (F,), jnp.float32)
    bias = 0.1 * jax.random.normal(kb, (F,), jnp.float32)
    rmean = 0.2 * jax.random.normal(km, (F,), jnp.float32)
    rvar = jnp.abs(jax.random.normal(kv, (F,), jnp.float32)) + 0.5
    out_ev, rm_ev, rv_ev = batchnorm1d_forward(
        x, weight, bias, rmean, rvar, training=False)
    jax.block_until_ready(out_ev)

    ref_out_ev, _, _ = reference_batchnorm1d(
        x, weight, bias, rmean, rvar, training=False)
    assert jnp.allclose(out_ev, ref_out_ev, rtol=1e-4, atol=1e-3)
    assert jnp.array_equal(rm_ev, rmean) and jnp.array_equal(rv_ev, rvar)

    print("KERNEL_OK")
</pallas_src>

<mosaic_0001>
module attributes {stable_mosaic.version = 11 : i64} {
  func.func @_bn_stats_kernel(%arg0: i32, %arg1: memref<256x256xf32, #tpu.memory_space<vmem>>, %arg2: memref<1x256xf32, #tpu.memory_space<vmem>>, %arg3: memref<1x256xf32, #tpu.memory_space<vmem>>) attributes {dimension_semantics = [#tpu.dimension_semantics<arbitrary>], iteration_bounds = array<i64: 4>, scalar_prefetch = 0 : i64, scratch_operands = 0 : i64, tpu.core_type = #tpu.core_type<tc>, window_params = [{transform_indices = @transform_0, window_bounds = array<i64: 256, 256>}, {pipeline_mode = #tpu.pipeline_mode<synchronous>, transform_indices = @transform_1, window_bounds = array<i64: 1, 256>}, {pipeline_mode = #tpu.pipeline_mode<synchronous>, transform_indices = @transform_2, window_bounds = array<i64: 1, 256>}]} {
    %c0_i32 = arith.constant 0 : i32
    %0 = arith.cmpi eq, %arg0, %c0_i32 : i32
    %1 = arith.extui %0 : i1 to i32
    %c0_i32_0 = arith.constant 0 : i32
    %2 = arith.cmpi ne, %1, %c0_i32_0 : i32
    scf.if %2 {
      %cst_11 = arith.constant 0.000000e+00 : f32
      %15 = vector.broadcast %cst_11 : f32 to vector<1x256xf32>
      %c0_12 = arith.constant 0 : index
      %c0_13 = arith.constant 0 : index
      %16 = vector.load %arg2[%c0_12, %c0_13] : memref<1x256xf32, #tpu.memory_space<vmem>>, vector<1x256xf32>
      tpu.vector_store %arg2[%c0_12, %c0_13], %15 {strides = array<i32>} : memref<1x256xf32, #tpu.memory_space<vmem>>, vector<1x256xf32>,
      %cst_14 = arith.constant 0.000000e+00 : f32
      %17 = vector.broadcast %cst_14 : f32 to vector<1x256xf32>
      %c0_15 = arith.constant 0 : index
      %c0_16 = arith.constant 0 : index
      %18 = vector.load %arg3[%c0_15, %c0_16] : memref<1x256xf32, #tpu.memory_space<vmem>>, vector<1x256xf32>
      tpu.vector_store %arg3[%c0_15, %c0_16], %17 {strides = array<i32>} : memref<1x256xf32, #tpu.memory_space<vmem>>, vector<1x256xf32>,
    } else {
    }
    %c0 = arith.constant 0 : index
    %c0_1 = arith.constant 0 : index
    %3 = vector.load %arg1[%c0, %c0_1] : memref<256x256xf32, #tpu.memory_space<vmem>>, vector<256x256xf32>
    %c0_2 = arith.constant 0 : index
    %c0_3 = arith.constant 0 : index
    %4 = vector.load %arg2[%c0_2, %c0_3] : memref<1x256xf32, #tpu.memory_space<vmem>>, vector<1x256xf32>
    %cst = arith.constant dense<0.000000e+00> : vector<256xf32>
    %5 = vector.multi_reduction <add>, %3, %cst [0] : vector<256x256xf32> to vector<256xf32>
    %6 = vector.shape_cast %5 : vector<256xf32> to vector<1x256xf32>
    %7 = arith.addf %4, %6 : vector<1x256xf32>
    %c0_4 = arith.constant 0 : index
    %c0_5 = arith.constant 0 : index
    %8 = vector.load %arg2[%c0_4, %c0_5] : memref<1x256xf32, #tpu.memory_space<vmem>>, vector<1x256xf32>
    tpu.vector_store %arg2[%c0_4, %c0_5], %7 {strides = array<i32>} : memref<1x256xf32, #tpu.memory_space<vmem>>, vector<1x256xf32>,
    %c0_6 = arith.constant 0 : index
    %c0_7 = arith.constant 0 : index
    %9 = vector.load %arg3[%c0_6, %c0_7] : memref<1x256xf32, #tpu.memory_space<vmem>>, vector<1x256xf32>
    %10 = arith.mulf %3, %3 : vector<256x256xf32>
    %cst_8 = arith.constant dense<0.000000e+00> : vector<256xf32>
    %11 = vector.multi_reduction <add>, %10, %cst_8 [0] : vector<256x256xf32> to vector<256xf32>
    %12 = vector.shape_cast %11 : vector<256xf32> to vector<1x256xf32>
    %13 = arith.addf %9, %12 : vector<1x256xf32>
    %c0_9 = arith.constant 0 : index
    %c0_10 = arith.constant 0 : index
    %14 = vector.load %arg3[%c0_9, %c0_10] : memref<1x256xf32, #tpu.memory_space<vmem>>, vector<1x256xf32>
    tpu.vector_store %arg3[%c0_9, %c0_10], %13 {strides = array<i32>} : memref<1x256xf32, #tpu.memory_space<vmem>>, vector<1x256xf32>,
    return
  }
  func.func @transform_0(%arg0: i32) -> (i32, i32) {
    %c0_i32 = arith.constant 0 : i32
    %c0_i32_0 = arith.constant 0 : i32
    return %arg0, %c0_i32 : i32, i32
  }
  func.func @transform_1(%arg0: i32) -> (i32, i32) {
    %c0_i32 = arith.constant 0 : i32
    %c0_i32_0 = arith.constant 0 : i32
    %c0_i32_1 = arith.constant 0 : i32
    return %c0_i32, %c0_i32_0 : i32, i32
  }
  func.func @transform_2(%arg0: i32) -> (i32, i32) {
    %c0_i32 = arith.constant 0 : i32
    %c0_i32_0 = arith.constant 0 : i32
    %c0_i32_1 = arith.constant 0 : i32
    return %c0_i32, %c0_i32_0 : i32, i32
  }
}

</mosaic_0001>

<bundles_post_ra>
// kernel: tpu_custom_call.1
= control target key start
LH: loop header
LB: loop body
LE: loop exit
PB: predicated region body
PF: predicated region fallthrough
CT: control target
= control target key end

     0   :  { %8 = vsyncpa [#allocation3], 0  ;;  %s1259_s0 = inlined_call_operand.hbm [shape: f32[1024,256], index: 0, kind: input, shape index: {}]   ;;  %s1260_s1 = inlined_call_operand.hbm [shape: f32[1,256], index: 1, kind: output, shape index: {0}]   ;;  %s1261_s2 = inlined_call_operand.hbm [shape: f32[1,256], index: 2, kind: output, shape index: {1}]  }
   0x1   :  { %10 = vsyncpa [#allocation3 + $0x1], 0 }
   0x2   :  { %11 = vsyncpa [#allocation4], 0 }
   0x3   :  { %12 = vsyncpa [#allocation7], 0  ;;  %s785_s9 = smov 0   ;;  %s787_s10 = smov 0  }
   0x4   :  { %s789_s11 = smov 0   ;;  %s791_s12 = smov 0  }
   0x5 LB: > { %s804_s13 = sadd.s32 4294967295, %s761_s12   ;;  %s807_s14 = sadd.s32 1, %s761_s12   ;;  %s761_s12 = sphi %s791_s12, %s1270_s12   ;;  %s757_s11 = sphi %s789_s11, %s1269_s11   ;;  %s753_s10 = sphi %s787_s10, %s1268_s10   ;;  %s749_s9 = sphi %s785_s9, %s1267_s9  }
   0x6   : > { %s22_s15 = ssub.s32 %s761_s12, %s807_s14  ;;  %s25_s16 = sadd.s32 1, %s757_s11 }
   0x7   : > { %p23_p0 = scmp.eq.s32.totalorder %s22_s15, 0  ;;  %p32_p1 = scmp.ne.s32.totalorder %s757_s11, %s753_s10 }
   0x8   : > { %p33_p2 = scmp.eq.s32.totalorder %s761_s12, 0  ;;  %p38_p3 = scmp.ne.s32.totalorder %s753_s10, %s749_s9 }
   0x9   : > { %s817_s17 = scalar_select %p23_p0, %s757_s11, %s25_s16  }
   0xa   : > { %p34_p4 = por %p33_p2, %p32_p1  ;;  %p39_p5 = scmp.eq.s32.totalorder %s804_s13, 0 }
   0xb   : > { %p594_p6 = scmp.lt.s32.totalorder %s761_s12, 4  ;;  %s104_s19 = sand.u32 1, %s757_s11  }
   0xc   : > { %p821_p7 = por %p39_p5, %p38_p3  ;;  %s565_s20 = sshll.u32 %s104_s19, 9 }
   0xd   : > { %s579_s21 = sshll.u32 %s761_s12, 13  ;;  %s108_s25 = scalar_lea.vmem [#allocation2], %s565_s20 }
   0xe   : > { %s830_s24 = scalar_lea.hbm %s1259_s0, %s579_s21  ;;  %s116_s26 = sshll.u32 %s108_s25, 4  ;;  %s832_s26 = int_to_ptr.vmem [resolvable:$true] %s116_s26 }
   0xf   : > { %p834_p8 = pnand %p594_p6, %p34_p4  ;;  %s839_s28 = scalar_lea.sflag [#allocation3], %s104_s19 }
  0x10   : > { %s637_s29 = scalar_lea.hbm %s830_s24, 8192  ;;  %s642_s4 = scalar_lea.hbm %s1259_s0, 32768 }
  0x11   : > { %p638_p10 = scmp.ne.s32.totalorder %s830_s24, %s637_s29  ;;  %p639_p11 = pneg %p834_p8 }
  0x12   : > { %p643_p0 = scmp.lt.u32.totalorder %s830_s24, %s1259_s0  ;;  %p644_p1 = scmp.lt.u32.totalorder %s642_s4, %s637_s29 }
  0x13   : > { %p640_p12 = pnand %p639_p11, %p638_p10  ;;  %p646_p3 = scmp.lt.u32.totalorder %s637_s29, %s830_s24 }
  0x14   : > { %p645_p2 = por %p644_p1, %p643_p0 }
  0x15   : > { %p641_p13 = pneg %p640_p12 }
  0x16   : > { %p647_p4 = por %p646_p3, %p645_p2 }
  0x18   : > { %p648_p5 = pnand %p647_p4, %p641_p13 }
  0x1a   : > { %651 = shalt.err (!%p648_p5)
}
  0x1b   : > { %s652_s7 = scalar_lea.vmem %s832_s26, 8192  ;;  %s763_s8 = smov [#allocation2]  }
  0x1c   : > { %p653_p6 = scmp.ne.s32.totalorder %s832_s26, %s652_s7  ;;  %s657_s9 = sshll.u32 %s763_s8, 4  ;;  %s658_s9 = int_to_ptr.vmem [resolvable:$false] %s657_s9 }
  0x1d   : > { %s659_s15 = scalar_lea.vmem %s658_s9, 16384  ;;  %p660_p9 = scmp.lt.s32.totalorder %s832_s26, %s658_s9 }
  0x1e   : > { %p655_p10 = pnand %p653_p6, %p639_p11  ;;  %p661_p0 = scmp.lt.s32.totalorder %s659_s15, %s652_s7 }
  0x20   : > { %p656_p12 = pneg %p655_p10  ;;  %p662_p1 = por %p661_p0, %p660_p9 }
  0x22   : > { %p663_p2 = pnand %p662_p1, %p656_p12 }
  0x24   : > { %666 = shalt.err (!%p663_p2)
}
  0x25   : > { %s764_s16 = smov 256   ;;  %s765_s19 = smov 16  }
  0x26   : > { %593 = dma.hbm_to_vmem [thread:$0]  (!%p834_p8), %s830_s24, 8192, %s832_s26, %s839_s28, %s764_s16, %s764_s16, %s765_s19  }
  0x27   : > { %p124_p11 = scmp.lt.s32.totalorder %s761_s12, 5  ;;  %p1264_p13 = scmp.ge.s32.totalorder %s761_s12, 1 }
  0x29   : > { %p125_p3 = pnand %p1264_p13, %p124_p11 }
  0x2a   : > { %s130_s20 = sand.u32 (!%p125_p3), 1, %s753_s10  }
  0x2b   : > { %128 = sbr.rel (%p125_p3) target bundleno = 193 (0xc1), region = 24  ;;  %s570_s21 = sshll.u32 (!%p125_p3), %s130_s20, 9 }
  0x2c   : > { %s131_s22 = scalar_lea.sflag (!%p125_p3), [#allocation3], %s130_s20  ;;  %s871_s23 = scalar_lea.vmem (!%p125_p3), [#allocation2], %s570_s21 }
  0x32   : > { %736 = dma.done.wait (%p821_p7), %s131_s22, 8192  }
  0x33   : > { %738 = vsyncadd (%p821_p7), %s131_s22, 4294959104  ;;  %p571_p9 = scmp.ne.s32.totalorder %s804_s13, 0 }
  0x34   : > { %v155_v0 = vlaneseq (!%p571_p9)  ;;  %v766_v1 = vmov (!%p571_p9), 0.0  }
  0x35   : > { %154 = sbr.rel (%p571_p9) target bundleno = 60 (0x3c), region = 32 }
  0x36   : > { %vm157_vm0 = vcmp.lt.s32.totalorder (!%p571_p9), %v155_v0, 256 }
  0x37   : > { %159 = vst.msk [vmem:[#allocation5] sm:$0x3] (!%p571_p9), %vm157_vm0, %v766_v1  ;;  %160 = vst.msk [vmem:[#allocation6] sm:$0x3] (!%p571_p9), %vm157_vm0, %v766_v1 }
  0x3c PF: > { %v161_v2 = vld [vmem:[%s871_s23] sm:$0xff]  ;;  %v163_v3 = vld [vmem:[%s871_s23 + $0x10] sm:$0xff]  ;;  %v162_v4 = vld [vmem:[%s871_s23 + $0x8] sm:$0xff]  ;;  %s768_s12 = smov [#allocation5]   ;;  %p595_p7 = scmp.eq.s32.totalorder %s804_s13, 3 }
  0x3d   : > { %v164_v5 = vld [vmem:[%s871_s23 + $0x18] sm:$0xff]  ;;  %v226_v6 = vadd.f32 %v163_v3, %v161_v2  ;;  %v165_v7 = vld [vmem:[%s871_s23 + $0x20] sm:$0xff]  ;;  %v166_v9 = vld [vmem:[%s871_s23 + $0x28] sm:$0xff]  ;;  %v325_v43 = vmul.f32 %v161_v2, %v161_v2  ;;  %v326_v46 = vmul.f32 %v162_v4, %v162_v4  ;;  %v327_v47 = vmul.f32 %v163_v3, %v163_v3  ;;  %s490_s18 = sshll.u32 %s768_s12, 4  ;;  %s491_s18 = int_to_ptr.vmem [resolvable:$true] %s490_s18 }
  0x3e   : > { %v263_v8 = vadd.f32 %v164_v5, %v162_v4  ;;  %v167_v11 = vld [vmem:[%s871_s23 + $0x30] sm:$0xff]  ;;  %v168_v13 = vld [vmem:[%s871_s23 + $0x38] sm:$0xff]  ;;  %v169_v15 = vld [vmem:[%s871_s23 + $0x40] sm:$0xff]  ;;  %v328_v48 = vmul.f32 %v164_v5, %v164_v5  ;;  %v329_v53 = vmul.f32 %v165_v7, %v165_v7  ;;  %v330_v54 = vmul.f32 %v166_v9, %v166_v9  ;;  %s667_s24 = scalar_lea.vmem %s491_s18, 32  ;;  %p674_p6 = scmp.lt.s32.totalorder %s491_s18, %s491_s18 }
  0x3f   : > { %v227_v10 = vadd.f32 %v226_v6, %v165_v7  ;;  %v170_v17 = vld [vmem:[%s871_s23 + $0x48] sm:$0xff]  ;;  %v171_v19 = vld [vmem:[%s871_s23 + $0x50] sm:$0xff]  ;;  %v172_v21 = vld [vmem:[%s871_s23 + $0x58] sm:$0xff]  ;;  %v331_v57 = vmul.f32 %v167_v11, %v167_v11  ;;  %v332_v60 = vmul.f32 %v168_v13, %v168_v13  ;;  %v389_v61 = vadd.f32 %v327_v47, %v325_v43  ;;  %p668_p8 = scmp.ne.s32.totalorder %s491_s18, %s667_s24  ;;  %p675_p10 = scmp.lt.s32.totalorder %s667_s24, %s667_s24 }
  0x40   : > { %v264_v12 = vadd.f32 %v263_v8, %v166_v9  ;;  %v173_v23 = vld [vmem:[%s871_s23 + $0x60] sm:$0xff]  ;;  %v174_v25 = vld [vmem:[%s871_s23 + $0x68] sm:$0xff]  ;;  %v175_v27 = vld [vmem:[%s871_s23 + $0x70] sm:$0xff]  ;;  %v426_v62 = vadd.f32 %v328_v48, %v326_v46  ;;  %v333_v1 = vmul.f32 %v169_v15, %v169_v15  ;;  %v334_v4 = vmul.f32 %v170_v17, %v170_v17 }
  0x41   : > { %v228_v14 = vadd.f32 %v227_v10, %v167_v11  ;;  %v894_v29 = vld [vmem:[%s871_s23 + $0x78] sm:$0xff]  ;;  %v897_v31 = vld [vmem:[%s871_s23 + $0x80] sm:$0xff]  ;;  %v901_v33 = vld [vmem:[%s871_s23 + $0x88] sm:$0xff]  ;;  %v390_v5 = vadd.f32 %v389_v61, %v329_v53  ;;  %v335_v9 = vmul.f32 %v171_v19, %v171_v19  ;;  %p669_p4 = pnand %p668_p8, %p595_p7  ;;  %p676_p12 = por %p675_p10, %p674_p6 }
  0x42   : > { %v265_v16 = vadd.f32 %v264_v12, %v168_v13  ;;  %v905_v35 = vld [vmem:[%s871_s23 + $0x90] sm:$0xff]  ;;  %v909_v37 = vld [vmem:[%s871_s23 + $0x98] sm:$0xff]  ;;  %v913_v39 = vld [vmem:[%s871_s23 + $0xa0] sm:$0xff]  ;;  %v427_v6 = vadd.f32 %v426_v62, %v330_v54  ;;  %v336_v12 = vmul.f32 %v172_v21, %v172_v21  ;;  %v342_v43 = vmul.f32 %v901_v33, %v901_v33 }
  0x43   : > { %v229_v18 = vadd.f32 %v228_v14, %v169_v15  ;;  %v917_v41 = vld [vmem:[%s871_s23 + $0xa8] sm:$0xff]  ;;  %v921_v44 = vld [vmem:[%s871_s23 + $0xb0] sm:$0xff]  ;;  %v925_v49 = vld [vmem:[%s871_s23 + $0xb8] sm:$0xff]  ;;  %v391_v13 = vadd.f32 %v390_v5, %v331_v57  ;;  %v343_v48 = vmul.f32 %v905_v35, %v905_v35  ;;  %v345_v57 = vmul.f32 %v913_v39, %v913_v39  ;;  %p670_p5 = pneg %p669_p4 }
  0x44   : > { %v266_v20 = vadd.f32 %v265_v16, %v170_v17  ;;  %v929_v51 = vld [vmem:[%s871_s23 + $0xc0] sm:$0xff]  ;;  %v933_v55 = vld [vmem:[%s871_s23 + $0xc8] sm:$0xff]  ;;  %v937_v58 = vld [vmem:[%s871_s23 + $0xd0] sm:$0xff]  ;;  %v428_v14 = vadd.f32 %v427_v6, %v332_v60  ;;  %v337_v17 = vmul.f32 %v173_v23, %v173_v23  ;;  %v346_v60 = vmul.f32 %v917_v41, %v917_v41 }
  0x45   : > { %v230_v22 = vadd.f32 %v229_v18, %v171_v19  ;;  %v941_v63 = vld [vmem:[%s871_s23 + $0xd8] sm:$0xff]  ;;  %v945_v2 = vld [vmem:[%s871_s23 + $0xe0] sm:$0xff]  ;;  %v949_v7 = vld [vmem:[%s871_s23 + $0xe8] sm:$0xff]  ;;  %v338_v19 = vmul.f32 %v174_v25, %v174_v25  ;;  %p677_p0 = pnand %p676_p12, %p670_p5 }
  0x46   : > { %v267_v24 = vadd.f32 %v266_v20, %v172_v21  ;;  %v953_v10 = vld [vmem:[%s871_s23 + $0xf0] sm:$0xff]  ;;  %v957_v15 = vld [vmem:[%s871_s23 + $0xf8] sm:$0xff]  ;;  %v961_v18 = vld [vmem:[%s871_s23 + $0x100] sm:$0xff] }
  0x47   : > { %v231_v26 = vadd.f32 %v230_v22, %v173_v23  ;;  %v392_v22 = vadd.f32 %v391_v13, %v333_v1  ;;  %v340_v23 = vmul.f32 %v894_v29, %v894_v29  ;;  %v987_v46 = vld [vmem:[%s871_s23 + $0x128] sm:$0xff]  ;;  %v999_v54 = vld [vmem:[%s871_s23 + $0x138] sm:$0xff]  ;;  %v347_v1 = vmul.f32 %v921_v44, %v921_v44 }
  0x48   : > { %v268_v28 = vadd.f32 %v267_v24, %v174_v25  ;;  %v429_v24 = vadd.f32 %v428_v14, %v334_v4  ;;  %v1011_v62 = vld [vmem:[%s871_s23 + $0x148] sm:$0xff]  ;;  %v348_v4 = vmul.f32 %v925_v49, %v925_v49  ;;  %v1023_v6 = vld [vmem:[%s871_s23 + $0x158] sm:$0xff] }
  0x49   : > { %v232_v30 = vadd.f32 %v231_v26, %v175_v27  ;;  %v965_v26 = vld [vmem:[%s871_s23 + $0x108] sm:$0xff] }
  0x4a   : > { %v269_v32 = vadd.f32 %v268_v28, %v894_v29  ;;  %v339_v28 = vmul.f32 %v175_v27, %v175_v27  ;;  %v1035_v14 = vld [vmem:[%s871_s23 + $0x168] sm:$0xff] }
  0x4b   : > { %v233_v34 = vadd.f32 %v232_v30, %v897_v31  ;;  %v969_v30 = vld [vmem:[%s871_s23 + $0x110] sm:$0xff] }
  0x4c   : > { %v270_v36 = vadd.f32 %v269_v32, %v901_v33 }
  0x4d   : > { %v234_v38 = vadd.f32 %v233_v34, %v905_v35  ;;  %v393_v34 = vadd.f32 %v392_v22, %v335_v9  ;;  %v349_v9 = vmul.f32 %v929_v51, %v929_v51 }
  0x4e   : > { %v271_v40 = vadd.f32 %v270_v36, %v909_v37  ;;  %v430_v36 = vadd.f32 %v429_v24, %v336_v12  ;;  %v350_v12 = vmul.f32 %v933_v55, %v933_v55  ;;  %v1047_v24 = vld [vmem:[%s871_s23 + $0x178] sm:$0xff] }
  0x4f   : > { %v235_v42 = vadd.f32 %v234_v38, %v913_v39  ;;  %v975_v38 = vld [vmem:[%s871_s23 + $0x118] sm:$0xff] }
  0x50   : > { %v272_v45 = vadd.f32 %v271_v40, %v917_v41  ;;  %v341_v40 = vmul.f32 %v897_v31, %v897_v31  ;;  %v431_v29 = vadd.f32 %v430_v36, %v338_v19  ;;  %v352_v19 = vmul.f32 %v941_v63, %v941_v63  ;;  %v1059_v36 = vld [vmem:[%s871_s23 + $0x188] sm:$0xff] }
  0x51   : > { %v236_v50 = vadd.f32 %v235_v42, %v921_v44  ;;  %v981_v42 = vld [vmem:[%s871_s23 + $0x120] sm:$0xff] }
  0x52   : > { %v273_v52 = vadd.f32 %v272_v45, %v925_v49  ;;  %v394_v45 = vadd.f32 %v393_v34, %v337_v17  ;;  %v432_v33 = vadd.f32 %v431_v29, %v340_v23  ;;  %v351_v17 = vmul.f32 %v937_v58, %v937_v58  ;;  %v1071_v29 = vld [vmem:[%s871_s23 + $0x198] sm:$0xff] }
  0x53   : > { %v237_v56 = vadd.f32 %v236_v50, %v929_v51  ;;  %v993_v50 = vld [vmem:[%s871_s23 + $0x130] sm:$0xff]  ;;  %v354_v23 = vmul.f32 %v949_v7, %v949_v7 }
  0x54   : > { %v274_v59 = vadd.f32 %v273_v52, %v933_v55  ;;  %v344_v52 = vmul.f32 %v909_v37, %v909_v37  ;;  %v395_v53 = vadd.f32 %v394_v45, %v339_v28  ;;  %v433_v37 = vadd.f32 %v432_v33, %v342_v43  ;;  %v1083_v33 = vld [vmem:[%s871_s23 + $0x1a8] sm:$0xff] }
  0x55   : > { %v238_v0 = vadd.f32 %v237_v56, %v937_v58  ;;  %v353_v28 = vmul.f32 %v945_v2, %v945_v2  ;;  %v356_v43 = vmul.f32 %v957_v15, %v957_v15 }
  0x56   : > { %v275_v3 = vadd.f32 %v274_v59, %v941_v63  ;;  %v1005_v59 = vld [vmem:[%s871_s23 + $0x140] sm:$0xff]  ;;  %v396_v61 = vadd.f32 %v395_v53, %v341_v40  ;;  %v434_v41 = vadd.f32 %v433_v37, %v344_v52  ;;  %v355_v40 = vmul.f32 %v953_v10, %v953_v10  ;;  %v1095_v37 = vld [vmem:[%s871_s23 + $0x1b8] sm:$0xff] }
  0x57   : > { %v239_v8 = vadd.f32 %v238_v0, %v945_v2  ;;  %v358_v52 = vmul.f32 %v965_v26, %v965_v26 }
  0x58   : > { %v276_v11 = vadd.f32 %v275_v3, %v949_v7  ;;  %v1017_v3 = vld [vmem:[%s871_s23 + $0x150] sm:$0xff]  ;;  %v397_v5 = vadd.f32 %v396_v61, %v343_v48  ;;  %v435_v49 = vadd.f32 %v434_v41, %v346_v60  ;;  %v357_v48 = vmul.f32 %v961_v18, %v961_v18  ;;  %v1107_v41 = vld [vmem:[%s871_s23 + $0x1c8] sm:$0xff] }
  0x59   : > { %v240_v16 = vadd.f32 %v239_v8, %v953_v10  ;;  %v360_v60 = vmul.f32 %v975_v38, %v975_v38 }
  0x5a   : > { %v277_v20 = vadd.f32 %v276_v11, %v957_v15  ;;  %v1029_v11 = vld [vmem:[%s871_s23 + $0x160] sm:$0xff]  ;;  %v398_v13 = vadd.f32 %v397_v5, %v345_v57  ;;  %v436_v55 = vadd.f32 %v435_v49, %v348_v4  ;;  %v359_v57 = vmul.f32 %v969_v30, %v969_v30  ;;  %v1119_v49 = vld [vmem:[%s871_s23 + $0x1d8] sm:$0xff] }
  0x5b   : > { %v241_v21 = vadd.f32 %v240_v16, %v961_v18  ;;  %v362_v4 = vmul.f32 %v987_v46, %v987_v46 }
  0x5c   : > { %v278_v32 = vadd.f32 %v277_v20, %v965_v26  ;;  %v1041_v20 = vld [vmem:[%s871_s23 + $0x170] sm:$0xff]  ;;  %v399_v22 = vadd.f32 %v398_v13, %v347_v1  ;;  %v437_v63 = vadd.f32 %v436_v55, %v350_v12  ;;  %v361_v1 = vmul.f32 %v981_v42, %v981_v42 }
  0x5d   : > { %v242_v25 = vadd.f32 %v241_v21, %v969_v30  ;;  %v364_v12 = vmul.f32 %v999_v54, %v999_v54 }
  0x5e   : > { %v279_v27 = vadd.f32 %v278_v32, %v975_v38  ;;  %v1053_v32 = vld [vmem:[%s871_s23 + $0x180] sm:$0xff]  ;;  %v400_v34 = vadd.f32 %v399_v22, %v349_v9  ;;  %v438_v7 = vadd.f32 %v437_v63, %v352_v19  ;;  %v363_v9 = vmul.f32 %v993_v50, %v993_v50 }
  0x5f   : > { %v243_v47 = vadd.f32 %v242_v25, %v981_v42  ;;  %v366_v19 = vmul.f32 %v1011_v62, %v1011_v62 }
  0x60   : > { %v280_v31 = vadd.f32 %v279_v27, %v987_v46  ;;  %v1065_v27 = vld [vmem:[%s871_s23 + $0x190] sm:$0xff]  ;;  %v401_v45 = vadd.f32 %v400_v34, %v351_v17  ;;  %v439_v15 = vadd.f32 %v438_v7, %v354_v23  ;;  %v365_v17 = vmul.f32 %v1005_v59, %v1005_v59 }
  0x61   : > { %v244_v56 = vadd.f32 %v243_v47, %v993_v50  ;;  %v368_v23 = vmul.f32 %v1023_v6, %v1023_v6 }
  0x62   : > { %v281_v35 = vadd.f32 %v280_v31, %v999_v54  ;;  %v1077_v31 = vld [vmem:[%s871_s23 + $0x1a0] sm:$0xff]  ;;  %v402_v53 = vadd.f32 %v401_v45, %v353_v28  ;;  %v440_v26 = vadd.f32 %v439_v15, %v356_v43  ;;  %v1131_v54 = vld [vmem:[%s871_s23 + $0x1e8] sm:$0xff]  ;;  %v367_v28 = vmul.f32 %v1017_v3, %v1017_v3 }
  0x63   : > { %v245_v0 = vadd.f32 %v244_v56, %v1005_v59  ;;  %v767_v15 = vmov 1966171168  }
  0x64   : > { %v282_v39 = vadd.f32 %v281_v35, %v1011_v62  ;;  %v1089_v35 = vld [vmem:[%s871_s23 + $0x1b0] sm:$0xff]  ;;  %v403_v61 = vadd.f32 %v402_v53, %v355_v40  ;;  %v441_v38 = vadd.f32 %v440_v26, %v358_v52  ;;  %v369_v40 = vmul.f32 %v1029_v11, %v1029_v11 }
  0x65   : > { %v246_v8 = vadd.f32 %v245_v0, %v1017_v3  ;;  %v370_v3 = vmul.f32 %v1035_v14, %v1035_v14  ;;  %v375_v26 = vmul.f32 %v1065_v27, %v1065_v27 }
  0x66   : > { %v283_v44 = vadd.f32 %v282_v39, %v1023_v6  ;;  %v1101_v39 = vld [vmem:[%s871_s23 + $0x1c0] sm:$0xff]  ;;  %v404_v5 = vadd.f32 %v403_v61, %v357_v48  ;;  %v442_v46 = vadd.f32 %v441_v38, %v360_v60  ;;  %v371_v6 = vmul.f32 %v1041_v20, %v1041_v20 }
  0x67   : > { %v247_v16 = vadd.f32 %v246_v8, %v1029_v11  ;;  %v372_v48 = vmul.f32 %v1047_v24, %v1047_v24  ;;  %v304_v11 = vunpack.c.l.s4 %v767_v15 }
  0x68   : > { %v284_v51 = vadd.f32 %v283_v44, %v1035_v14  ;;  %v1113_v44 = vld [vmem:[%s871_s23 + $0x1d0] sm:$0xff]  ;;  %v405_v13 = vadd.f32 %v404_v5, %v359_v57  ;;  %v443_v55 = vadd.f32 %v442_v46, %v362_v4  ;;  %v373_v57 = vmul.f32 %v1053_v32, %v1053_v32 }
  0x69   : > { %v248_v21 = vadd.f32 %v247_v16, %v1041_v20  ;;  %v305_v5 = vunpack.c.0.s8 %v304_v11 }
  0x6a   : > { %v285_v58 = vadd.f32 %v284_v51, %v1047_v24  ;;  %v1125_v51 = vld [vmem:[%s871_s23 + $0x1e0] sm:$0xff]  ;;  %v406_v22 = vadd.f32 %v405_v13, %v361_v1  ;;  %v444_v63 = vadd.f32 %v443_v55, %v364_v12 }
  0x6b   : > { %v249_v25 = vadd.f32 %v248_v21, %v1053_v32  ;;  %v377_v32 = vmul.f32 %v1077_v31, %v1077_v31 }
  0x6c   : > { %v286_v2 = vadd.f32 %v285_v58, %v1059_v36  ;;  %v1137_v58 = vld [vmem:[%s871_s23 + $0x1f0] sm:$0xff]  ;;  %v407_v34 = vadd.f32 %v406_v22, %v363_v9  ;;  %v445_v45 = vadd.f32 %v444_v63, %v366_v19 }
  0x6d   : > { %v250_v47 = vadd.f32 %v249_v25, %v1065_v27  ;;  %v1143_v25 = vld [vmem:[%s871_s23 + $0x1f8] sm:$0xff]  ;;  %v379_v27 = vmul.f32 %v1089_v35, %v1089_v35 }
  0x6e   : > { %v287_v10 = vadd.f32 %v286_v2, %v1071_v29  ;;  %v408_v43 = vadd.f32 %v407_v34, %v365_v17  ;;  %v446_v52 = vadd.f32 %v445_v45, %v368_v23  ;;  %v385_v23 = vmul.f32 %v1125_v51, %v1125_v51 }
  0x6f   : > { %v251_v56 = vadd.f32 %v250_v47, %v1077_v31  ;;  %v381_v31 = vmul.f32 %v1101_v39, %v1101_v39 }
  0x70   : > { %v288_v18 = vadd.f32 %v287_v10, %v1083_v33  ;;  %v409_v10 = vadd.f32 %v408_v43, %v367_v28  ;;  %v447_v61 = vadd.f32 %v446_v52, %v370_v3 }
  0x71   : > { %v252_v0 = vadd.f32 %v251_v56, %v1089_v35  ;;  %v306_v56 = vlaneseq  ;;  %v383_v35 = vmul.f32 %v1113_v44, %v1113_v44 }
  0x72   : > { %v289_v30 = vadd.f32 %v288_v18, %v1095_v37  ;;  %v374_v18 = vmul.f32 %v1059_v36, %v1059_v36  ;;  %v410_v60 = vadd.f32 %v409_v10, %v369_v40  ;;  %v378_v36 = vmul.f32 %v1083_v33, %v1083_v33 }
  0x73   : > { %v253_v8 = vadd.f32 %v252_v0, %v1101_v39  ;;  %v376_v0 = vmul.f32 %v1071_v29, %v1071_v29  ;;  %v307_v38 = vshrl.u32 %v306_v56, 7  ;;  %v380_v29 = vmul.f32 %v1095_v37, %v1095_v37 }
  0x74   : > { %v290_v42 = vadd.f32 %v289_v30, %v1107_v41  ;;  %v411_v1 = vadd.f32 %v410_v60, %v371_v6  ;;  %v448_v30 = vadd.f32 %v447_v61, %v372_v48  ;;  %v382_v33 = vmul.f32 %v1107_v41, %v1107_v41 }
  0x75   : > { %v254_v16 = vadd.f32 %v253_v8, %v1113_v44  ;;  %v384_v37 = vmul.f32 %v1119_v49, %v1119_v49  ;;  %v386_v41 = vmul.f32 %v1131_v54, %v1131_v54  ;;  %v387_v44 = vmul.f32 %v1137_v58, %v1137_v58 }
  0x76   : > { %v291_v50 = vadd.f32 %v290_v42, %v1119_v49  ;;  %v412_v9 = vadd.f32 %v411_v1, %v373_v57  ;;  %v449_v42 = vadd.f32 %v448_v30, %v374_v18  ;;  %v388_v40 = vmul.f32 %v1143_v25, %v1143_v25 }
  0x77   : > { %v255_v21 = vadd.f32 %v254_v16, %v1125_v51  ;;  %vm1191_vm1 = vcmp.lt.s32.totalorder %v306_v56, 256 }
  0x78   : > { %v292_v59 = vadd.f32 %v291_v50, %v1131_v54  ;;  %v413_v46 = vadd.f32 %v412_v9, %v375_v26  ;;  %v450_v16 = vadd.f32 %v449_v42, %v376_v0  ;;  %v1171_v50 = vsub.s32 %v305_v5, %v307_v38 }
  0x79   : > { %v256_v62 = vadd.f32 %v255_v21, %v1137_v58 }
  0x7a   : > { %v293_v2 = vadd.f32 %v292_v59, %v1143_v25  ;;  %v414_v22 = vadd.f32 %v413_v46, %v377_v32  ;;  %v451_v55 = vadd.f32 %v450_v16, %v378_v36 }
  0x7b   : > { %v257_v7 = vrot.slane %v256_v62, 4 }
  0x7c   : > { %v294_v47 = vrot.slane %v293_v2, 4  ;;  %v415_v28 = vadd.f32 %v414_v22, %v379_v27  ;;  %v452_v59 = vadd.f32 %v451_v55, %v380_v29 }
  0x7d   : > { %v258_v53 = vadd.f32 %v257_v7, %v256_v62  ;;  %v225_v62 = vld [vmem:[#allocation5] sm:$0x3] }
  0x7e   : > { %v295_v14 = vadd.f32 %v294_v47, %v293_v2  ;;  %v416_v34 = vadd.f32 %v415_v28, %v381_v31  ;;  %v453_v63 = vadd.f32 %v452_v59, %v382_v33 }
  0x7f   : > { %v259_v20 = vrot.slane %v258_v53, 2 }
  0x80   : > { %v296_v24 = vrot.slane %v295_v14, 2  ;;  %v417_v51 = vadd.f32 %v416_v34, %v383_v35  ;;  %v454_v2 = vadd.f32 %v453_v63, %v384_v37 }
  0x81   : > { %v260_v4 = vadd.f32 %v259_v20, %v258_v53 }
  0x82   : > { %v297_v8 = vadd.f32 %v296_v24, %v295_v14  ;;  %v418_v43 = vadd.f32 %v417_v51, %v385_v23  ;;  %v455_v45 = vadd.f32 %v454_v2, %v386_v41 }
  0x83   : > { %v261_v12 = vrot.slane %v260_v4, 1 }
  0x84   : > { %v298_v13 = vrot.slane %v297_v8, 1  ;;  %v419_v58 = vadd.f32 %v418_v43, %v387_v44  ;;  %v456_v7 = vadd.f32 %v455_v45, %v388_v40 }
  0x85   : > { %v262_v17 = vadd.f32 %v261_v12, %v260_v4 }
  0x86   : > { %v299_v19 = vadd.f32 %v298_v13, %v297_v8 }
  0x88   : > { %v302_v21 = vcombine.low %v262_v17, %v299_v19 }
  0x8a   : > { %v309_v39 = vrot.slane %v302_v21, %v1171_v50 }
  0x8c   : > { %v316_v49 = vrot.slane %v309_v39, %v1171_v50 }
  0x8e   : > { %v318_v54 = vadd.f32 %v316_v49, %v225_v62 }
  0x90   : > { %323 = vst.msk [vmem:[#allocation5] sm:$0x3] %vm1191_vm1, %v318_v54 }
  0x91   : > { %680 = shalt.err (!%p677_p0)
}
  0x92   : > { %s681_s27 = scalar_lea.hbm %s1260_s1, 32 }
  0x93   : > { %p682_p1 = scmp.ne.s32.totalorder %s1260_s1, %s681_s27  ;;  %p687_p13 = scmp.lt.u32.totalorder %s681_s27, %s1260_s1 }
  0x95   : > { %p683_p2 = pnand %p682_p1, %p595_p7 }
  0x97   : > { %p684_p11 = pneg %p683_p2 }
  0x99   : > { %p689_p3 = pnand %p687_p13, %p684_p11 }
  0x9b   : > { %692 = shalt.err (!%p689_p3)
}
  0x9c   : > { %583 = dma.vmem_to_hbm [thread:$0]  (%p595_p7), %s491_s18, 32, %s1260_s1, [#allocation4]   ;;  %v420_v25 = vrot.slane %v419_v58, 4  ;;  %v457_v6 = vrot.slane %v456_v7, 4  ;;  %v324_v61 = vld [vmem:[#allocation6] sm:$0x3] }
  0x9d   : > { %s769_s6 = smov [#allocation6]  }
  0x9e   : > { %v421_v47 = vadd.f32 %v420_v25, %v419_v58  ;;  %v458_v48 = vadd.f32 %v457_v6, %v456_v7  ;;  %s501_s7 = sshll.u32 %s769_s6, 4  ;;  %s502_s7 = int_to_ptr.vmem [resolvable:$true] %s501_s7 }
  0x9f   : > { %s693_s8 = scalar_lea.vmem %s502_s7, 32  ;;  %p700_p5 = scmp.lt.s32.totalorder %s502_s7, %s502_s7 }
  0xa0   : > { %v422_v10 = vrot.slane %v421_v47, 2  ;;  %v459_v52 = vrot.slane %v458_v48, 2  ;;  %p694_p9 = scmp.ne.s32.totalorder %s502_s7, %s693_s8  ;;  %p701_p6 = scmp.lt.s32.totalorder %s693_s8, %s693_s8 }
  0xa2   : > { %v423_v53 = vadd.f32 %v422_v10, %v421_v47  ;;  %v460_v15 = vadd.f32 %v459_v52, %v458_v48  ;;  %p695_p8 = pnand %p694_p9, %p595_p7  ;;  %p702_p10 = por %p701_p6, %p700_p5 }
  0xa4   : > { %v424_v11 = vrot.slane %v423_v53, 1  ;;  %v461_v56 = vrot.slane %v460_v15, 1  ;;  %p696_p4 = pneg %p695_p8 }
  0xa6   : > { %v425_v57 = vadd.f32 %v424_v11, %v423_v53  ;;  %v462_v14 = vadd.f32 %v461_v56, %v460_v15  ;;  %p703_p12 = pnand %p702_p10, %p696_p4 }
  0xa8   : > { %v465_v18 = vcombine.low %v425_v57, %v462_v14 }
  0xaa   : > { %v472_v60 = vrot.slane %v465_v18, %v1171_v50 }
  0xac   : > { %v479_v20 = vrot.slane %v472_v60, %v1171_v50 }
  0xae   : > { %v481_v26 = vadd.f32 %v479_v20, %v324_v61 }
  0xb0   : > { %482 = vst.msk [vmem:[#allocation6] sm:$0x3] %vm1191_vm1, %v481_v26 }
  0xb1   : > { %706 = shalt.err (!%p703_p12)
}
  0xb2   : > { %s707_s16 = scalar_lea.hbm %s1261_s2, 32 }
  0xb3   : > { %p708_p0 = scmp.ne.s32.totalorder %s1261_s2, %s707_s16  ;;  %p713_p11 = scmp.lt.u32.totalorder %s707_s16, %s1261_s2 }
  0xb5   : > { %p709_p1 = pnand %p708_p0, %p595_p7 }
  0xb7   : > { %p710_p2 = pneg %p709_p1 }
  0xb9   : > { %p715_p13 = pnand %p713_p11, %p710_p2 }
  0xbb   : > { %718 = shalt.err (!%p715_p13)
}
  0xbc   : > { %585 = dma.vmem_to_hbm [thread:$0]  (%p595_p7), %s502_s7, 32, %s1261_s2, [#allocation7]  }
  0xbd   : > { %740 = dma.done.wait (%p595_p7), [#allocation4], 32  }
  0xbe   : > { %742 = vsyncadd (%p595_p7), [#allocation4], 4294967264 }
  0xbf   : > { %744 = dma.done.wait (%p595_p7), [#allocation7], 32  }
  0xc0   : > { %746 = vsyncadd (%p595_p7), [#allocation7], 4294967264 }
  0xc1 PF: > { %p15_p3 = scmp.ge.s32.totalorder %s807_s14, 6   ;;  %s1267_s9 = smov %s753_s10 }
  0xc2   : > { %s1268_s10 = smov %s757_s11  ;;  %s1269_s11 = smov %s817_s17 }
  0xc3   : > { %s1270_s12 = smov %s807_s14  ;;  %17 = sbr.rel (!%p15_p3) target bundleno = 5 (0x5), region = 73 }
  0xca   :  { %518 = vsyncpa [#allocation3], 1 }
  0xcb   :  { %520 = vsyncpa [#allocation3 + $0x1], 1 }
  0xcc   :  { %521 = vsyncpa [#allocation4], 1 }
  0xcd   :  { %523 = vsyncpa [#allocation4 + $0x1], 1 }
  0xce   :  { %524 = vsyncpa [#allocation7], 1 }

</bundles_post_ra>
